<compile_context>
chip_gen: v5e
topology: v5e:2x2
jax: 0.10.0
libtpu: 0.0.40
codegen_flags: <defaults>
</compile_context>

<pallas_src>
import functools
from typing import NamedTuple

import jax
import jax.numpy as jnp
from jax.experimental import pallas as pl
from jax.experimental.pallas import tpu as pltpu

LANE = 128  # TPU lane width (last-dim tile)


def _round_up(n, m):
    return (n + m - 1) // m * m


def _default_compute_dtype():
    """bf16 MXU dtype on v6e/v7x, f32 otherwise (detection failures fall back to f32)."""
    try:
        kind = jax.devices()[0].device_kind.lower()
    except Exception:  # pragma: no cover - defensive
        return jnp.float32
    return jnp.bfloat16 if ("v6" in kind or "v7" in kind) else jnp.float32


class TeacherParams(NamedTuple):
    w1: jax.Array
    b1: jax.Array
    w2: jax.Array
    b2: jax.Array
    w3: jax.Array
    b3: jax.Array
    input_dim: int
    hidden_dim: int
    output_dim: int


def teacher_kernel(x_ref, w1_ref, b1_ref, w2_ref, b2_ref, w3_ref, b3_ref, o_ref):
    # fc1: x @ W1 + b1   (no activation after fc1, matching the PyTorch forward)
    h1 = jnp.dot(x_ref[...], w1_ref[...], preferred_element_type=jnp.float32) + b1_ref[...]
    # fc2: h1 @ W2 + b2  (cast back to the weight dtype for the MXU; accumulate in f32)
    h2 = jnp.dot(h1.astype(w2_ref.dtype), w2_ref[...],
                 preferred_element_type=jnp.float32) + b2_ref[...]
    # ReLU in f32 on the VPU
    h2 = jnp.maximum(h2, 0.0)
    # fc3: h2 @ W3 + b3
    out = jnp.dot(h2.astype(w3_ref.dtype), w3_ref[...],
                  preferred_element_type=jnp.float32) + b3_ref[...]
    o_ref[...] = out.astype(o_ref.dtype)


def prepare_teacher_params(w1, b1, w2, b2, w3, b3, *, compute_dtype=None):
    """Pad / cast the weights ONCE (hoisted out of the per-call forward path).

    Weights are (in_features, out_features); biases may be 1-D (dim,) or 2-D (1, dim).
    Only the hidden/output (N and matching K) dims are zero-padded to the 128-lane
    width; the true input feature dim is left unpadded so x streams at its real width.
    Zero padding contributes nothing to the dots, so numerics are unchanged.
    """
    if compute_dtype is None:
        compute_dtype = _default_compute_dtype()

    w1 = jnp.asarray(w1)
    w3 = jnp.asarray(w3)
    input_dim, hidden_dim = w1.shape
    output_dim = w3.shape[1]
    hid_p = _round_up(hidden_dim, LANE)
    out_p = _round_up(output_dim, LANE)

    def pad2(a, rows, cols, dt):
        a = jnp.asarray(a)
        if a.ndim == 1:
            a = a[None, :]
        buf = jnp.zeros((rows, cols), dt)
        return buf.at[: a.shape[0], : a.shape[1]].set(a.astype(dt))

    return TeacherParams(
        w1=pad2(w1, input_dim, hid_p, compute_dtype),
        b1=pad2(b1, 1, hid_p, jnp.float32),
        w2=pad2(w2, hid_p, hid_p, compute_dtype),
        b2=pad2(b2, 1, hid_p, jnp.float32),
        w3=pad2(w3, hid_p, out_p, compute_dtype),
        b3=pad2(b3, 1, out_p, jnp.float32),
        input_dim=int(input_dim),
        hidden_dim=int(hidden_dim),
        output_dim=int(output_dim),
    )


def teacher_forward(x, params: TeacherParams, *, block_b=256):
    """3-layer MLP forward with a fused Pallas TPU kernel.

    x: (..., input_dim) float array.  params: output of prepare_teacher_params.
    """
    in_dim = params.input_dim
    orig_shape = x.shape
    assert orig_shape[-1] == in_dim, "last dim of x must equal input_dim"
    x2 = x.reshape(-1, in_dim)
    B = x2.shape[0]
    out_dtype = x.dtype

    mxu_dtype = params.w1.dtype
    itemsize = jnp.dtype(mxu_dtype).itemsize
    # sublane granule: 8 rows (f32), 16 (bf16), 32 (int8/fp8) -- packed dtypes need it
    granule = 8 * (4 // itemsize)

    hid_p = params.w1.shape[1]
    out_p = params.w3.shape[1]

    # Batch tiling: large tile; small batches collapse to a single grid step.
    B_r = _round_up(B, granule)
    bb = min(_round_up(block_b, granule), B_r)
    B_p = _round_up(B_r, bb)

    x_p = x2.astype(mxu_dtype)
    if B_p != B:
        x_p = jnp.zeros((B_p, in_dim), mxu_dtype).at[:B].set(x_p)

    # VMEM budget: single-buffered resident weights + double-buffered x/out stream
    # + headroom for f32 intermediates.  Raise the scoped default (16 MiB v5e / 32 MiB
    # v6e-v7x) but never above v7x's 64 MiB physical VMEM.
    out_itemsize = jnp.dtype(out_dtype).itemsize
    weight_bytes = (in_dim * hid_p + hid_p * hid_p + hid_p * out_p) * itemsize
    bias_bytes = (2 * hid_p + out_p) * 4
    stream_bytes = 2 * bb * (in_dim * itemsize + out_p * out_itemsize)
    scratch_bytes = 3 * bb * hid_p * 4
    vmem_need = weight_bytes + bias_bytes + stream_bytes + scratch_bytes
    vmem_limit = int(min(64 << 20, max(32 << 20, 2 * vmem_need)))

    grid = (B_p // bb,)

    # Resident weights/biases: constant index_map, fetched once, single-buffered.
    def resident_spec(shape):
        return pl.BlockSpec(shape, lambda i: (0, 0), pipeline_mode=pl.Buffered(1))

    out = pl.pallas_call(
        teacher_kernel,
        out_shape=jax.ShapeDtypeStruct((B_p, out_p), out_dtype),
        grid_spec=pl.GridSpec(
            grid=grid,
            in_specs=[
                # batch-streamed activation tile; last dim == full input_dim (unpadded)
                pl.BlockSpec((bb, in_dim), lambda i: (i, 0)),
                resident_spec((in_dim, hid_p)),   # W1
                resident_spec((1, hid_p)),        # b1
                resident_spec((hid_p, hid_p)),    # W2
                resident_spec((1, hid_p)),        # b2
                resident_spec((hid_p, out_p)),    # W3
                resident_spec((1, out_p)),        # b3
            ],
            out_specs=pl.BlockSpec((bb, out_p), lambda i: (i, 0)),
        ),
        compiler_params=pltpu.CompilerParams(
            dimension_semantics=("parallel",),  # batch steps can shard across TCs
            vmem_limit_bytes=vmem_limit,
        ),
    )(x_p, params.w1, params.b1, params.w2, params.b2, params.w3, params.b3)

    out = out[:B, : params.output_dim]
    return out.reshape(*orig_shape[:-1], params.output_dim)


def init_params(key, input_dim, hidden_dim, output_dim):
    """Synthetic init, roughly PyTorch's default fan-in uniform.

    Weights are (in_features, out_features); biases are 1-D like PyTorch's.
    """
    ks = jax.random.split(key, 6)

    def uniform(k, shape, fan_in):
        bound = 1.0 / jnp.sqrt(fan_in)
        return jax.random.uniform(k, shape, jnp.float32, -bound, bound)

    w1 = uniform(ks[0], (input_dim, hidden_dim), input_dim)
    b1 = uniform(ks[1], (hidden_dim,), input_dim)
    w2 = uniform(ks[2], (hidden_dim, hidden_dim), hidden_dim)
    b2 = uniform(ks[3], (hidden_dim,), hidden_dim)
    w3 = uniform(ks[4], (hidden_dim, output_dim), hidden_dim)
    b3 = uniform(ks[5], (output_dim,), hidden_dim)
    return w1, b1, w2, b2, w3, b3


def reference_forward(x, w1, b1, w2, b2, w3, b3):
    h1 = x @ w1 + b1
    h2 = h1 @ w2 + b2
    h2 = jnp.maximum(h2, 0.0)
    return h2 @ w3 + b3


if __name__ == "__main__":
    # Small shapes consistent with the module: input_dim=32, hidden=64, output=16.
    input_dim, hidden_dim, output_dim = 32, 64, 16

    key = jax.random.PRNGKey(0)
    kx1, kx2, kp = jax.random.split(key, 3)
    raw = init_params(kp, input_dim, hidden_dim, output_dim)

    # Case 1: small batch, f32 MXU compute -- tight check against the reference.
    p_f32 = prepare_teacher_params(*raw, compute_dtype=jnp.float32)
    B1 = 8
    x1 = jax.random.normal(kx1, (B1, input_dim), jnp.float32)
    out1 = jax.block_until_ready(teacher_forward(x1, p_f32))
    ref1 = reference_forward(x1, *raw)
    assert out1.shape == (B1, output_dim)
    assert jnp.allclose(out1, ref1, atol=1e-4, rtol=1e-4)

    # Case 2: ragged batch (not a multiple of the tile), multiple grid steps,
    # bf16 MXU compute path (f32 accumulation / bias-add / ReLU stay f32).
    p_bf16 = prepare_teacher_params(*raw, compute_dtype=jnp.bfloat16)
    B2 = 200
    x2 = jax.random.normal(kx2, (B2, input_dim), jnp.float32)
    out2 = jax.block_until_ready(teacher_forward(x2, p_bf16, block_b=64))
    ref2 = reference_forward(x2, *raw)
    assert out2.shape == (B2, output_dim)
    assert jnp.allclose(out2, ref2, atol=5e-2, rtol=5e-2)

    print("KERNEL_OK")
</pallas_src>

<mosaic_0001>
module attributes {stable_mosaic.version = 11 : i64} {
  func.func @teacher_kernel(%arg0: i32, %arg1: memref<8x32xf32, #tpu.memory_space<vmem>>, %arg2: memref<32x128xf32, #tpu.memory_space<vmem>>, %arg3: memref<1x128xf32, #tpu.memory_space<vmem>>, %arg4: memref<128x128xf32, #tpu.memory_space<vmem>>, %arg5: memref<1x128xf32, #tpu.memory_space<vmem>>, %arg6: memref<128x128xf32, #tpu.memory_space<vmem>>, %arg7: memref<1x128xf32, #tpu.memory_space<vmem>>, %arg8: memref<8x128xf32, #tpu.memory_space<vmem>>) attributes {dimension_semantics = [#tpu.dimension_semantics<parallel>], iteration_bounds = array<i64: 1>, scalar_prefetch = 0 : i64, scratch_operands = 0 : i64, tpu.core_type = #tpu.core_type<tc>, window_params = [{transform_indices = @transform_0, window_bounds = array<i64: 8, 32>}, {pipeline_mode = #tpu.pipeline_mode<synchronous>, transform_indices = @transform_1, window_bounds = array<i64: 32, 128>}, {pipeline_mode = #tpu.pipeline_mode<synchronous>, transform_indices = @transform_2, window_bounds = array<i64: 1, 128>}, {pipeline_mode = #tpu.pipeline_mode<synchronous>, transform_indices = @transform_3, window_bounds = array<i64: 128, 128>}, {pipeline_mode = #tpu.pipeline_mode<synchronous>, transform_indices = @transform_4, window_bounds = array<i64: 1, 128>}, {pipeline_mode = #tpu.pipeline_mode<synchronous>, transform_indices = @transform_5, window_bounds = array<i64: 128, 128>}, {pipeline_mode = #tpu.pipeline_mode<synchronous>, transform_indices = @transform_6, window_bounds = array<i64: 1, 128>}, {transform_indices = @transform_7, window_bounds = array<i64: 8, 128>}]} {
    %c0 = arith.constant 0 : index
    %c0_0 = arith.constant 0 : index
    %0 = vector.load %arg1[%c0, %c0_0] : memref<8x32xf32, #tpu.memory_space<vmem>>, vector<8x32xf32>
    %c0_1 = arith.constant 0 : index
    %c0_2 = arith.constant 0 : index
    %1 = vector.load %arg2[%c0_1, %c0_2] : memref<32x128xf32, #tpu.memory_space<vmem>>, vector<32x128xf32>
    %cst = arith.constant dense<0.000000e+00> : vector<8x128xf32>
    %2 = tpu.matmul %0, %1, %cst {dimension_numbers = #tpu.dot_dimension_numbers<[1], [0], [0], [1], [0, 0, 1, 1], [], []>} : vector<8x32xf32>, vector<32x128xf32>, vector<8x128xf32> -> vector<8x128xf32>
    %c0_3 = arith.constant 0 : index
    %c0_4 = arith.constant 0 : index
    %3 = vector.load %arg3[%c0_3, %c0_4] : memref<1x128xf32, #tpu.memory_space<vmem>>, vector<1x128xf32>
    %4 = vector.broadcast %3 : vector<1x128xf32> to vector<8x128xf32>
    %5 = arith.addf %2, %4 : vector<8x128xf32>
    %c0_5 = arith.constant 0 : index
    %c0_6 = arith.constant 0 : index
    %6 = vector.load %arg4[%c0_5, %c0_6] : memref<128x128xf32, #tpu.memory_space<vmem>>, vector<128x128xf32>
    %cst_7 = arith.constant dense<0.000000e+00> : vector<8x128xf32>
    %7 = tpu.matmul %5, %6, %cst_7 {dimension_numbers = #tpu.dot_dimension_numbers<[1], [0], [0], [1], [0, 0, 1, 1], [], []>} : vector<8x128xf32>, vector<128x128xf32>, vector<8x128xf32> -> vector<8x128xf32>
    %c0_8 = arith.constant 0 : index
    %c0_9 = arith.constant 0 : index
    %8 = vector.load %arg5[%c0_8, %c0_9] : memref<1x128xf32, #tpu.memory_space<vmem>>, vector<1x128xf32>
    %9 = vector.broadcast %8 : vector<1x128xf32> to vector<8x128xf32>
    %10 = arith.addf %7, %9 : vector<8x128xf32>
    %cst_10 = arith.constant 0.000000e+00 : f32
    %11 = vector.broadcast %cst_10 : f32 to vector<8x128xf32>
    %12 = arith.maximumf %10, %11 : vector<8x128xf32>
    %c0_11 = arith.constant 0 : index
    %c0_12 = arith.constant 0 : index
    %13 = vector.load %arg6[%c0_11, %c0_12] : memref<128x128xf32, #tpu.memory_space<vmem>>, vector<128x128xf32>
    %cst_13 = arith.constant dense<0.000000e+00> : vector<8x128xf32>
    %14 = tpu.matmul %12, %13, %cst_13 {dimension_numbers = #tpu.dot_dimension_numbers<[1], [0], [0], [1], [0, 0, 1, 1], [], []>} : vector<8x128xf32>, vector<128x128xf32>, vector<8x128xf32> -> vector<8x128xf32>
    %c0_14 = arith.constant 0 : index
    %c0_15 = arith.constant 0 : index
    %15 = vector.load %arg7[%c0_14, %c0_15] : memref<1x128xf32, #tpu.memory_space<vmem>>, vector<1x128xf32>
    %16 = vector.broadcast %15 : vector<1x128xf32> to vector<8x128xf32>
    %17 = arith.addf %14, %16 : vector<8x128xf32>
    %c0_16 = arith.constant 0 : index
    %c0_17 = arith.constant 0 : index
    %18 = vector.load %arg8[%c0_16, %c0_17] : memref<8x128xf32, #tpu.memory_space<vmem>>, vector<8x128xf32>
    tpu.vector_store %arg8[%c0_16, %c0_17], %17 {strides = array<i32>} : memref<8x128xf32, #tpu.memory_space<vmem>>, vector<8x128xf32>,
    return
  }
  func.func @transform_0(%arg0: i32) -> (i32, i32) {
    %c0_i32 = arith.constant 0 : i32
    %c0_i32_0 = arith.constant 0 : i32
    return %arg0, %c0_i32 : i32, i32
  }
  func.func @transform_1(%arg0: i32) -> (i32, i32) {
    %c0_i32 = arith.constant 0 : i32
    %c0_i32_0 = arith.constant 0 : i32
    %c0_i32_1 = arith.constant 0 : i32
    return %c0_i32, %c0_i32_0 : i32, i32
  }
  func.func @transform_2(%arg0: i32) -> (i32, i32) {
    %c0_i32 = arith.constant 0 : i32
    %c0_i32_0 = arith.constant 0 : i32
    %c0_i32_1 = arith.constant 0 : i32
    return %c0_i32, %c0_i32_0 : i32, i32
  }
  func.func @transform_3(%arg0: i32) -> (i32, i32) {
    %c0_i32 = arith.constant 0 : i32
    %c0_i32_0 = arith.constant 0 : i32
    %c0_i32_1 = arith.constant 0 : i32
    return %c0_i32, %c0_i32_0 : i32, i32
  }
  func.func @transform_4(%arg0: i32) -> (i32, i32) {
    %c0_i32 = arith.constant 0 : i32
    %c0_i32_0 = arith.constant 0 : i32
    %c0_i32_1 = arith.constant 0 : i32
    return %c0_i32, %c0_i32_0 : i32, i32
  }
  func.func @transform_5(%arg0: i32) -> (i32, i32) {
    %c0_i32 = arith.constant 0 : i32
    %c0_i32_0 = arith.constant 0 : i32
    %c0_i32_1 = arith.constant 0 : i32
    return %c0_i32, %c0_i32_0 : i32, i32
  }
  func.func @transform_6(%arg0: i32) -> (i32, i32) {
    %c0_i32 = arith.constant 0 : i32
    %c0_i32_0 = arith.constant 0 : i32
    %c0_i32_1 = arith.constant 0 : i32
    return %c0_i32, %c0_i32_0 : i32, i32
  }
  func.func @transform_7(%arg0: i32) -> (i32, i32) {
    %c0_i32 = arith.constant 0 : i32
    %c0_i32_0 = arith.constant 0 : i32
    return %arg0, %c0_i32 : i32, i32
  }
}

</mosaic_0001>

<bundles_post_ra>
// kernel: tpu_custom_call.1
= control target key start
LH: loop header
LB: loop body
LE: loop exit
PB: predicated region body
PF: predicated region fallthrough
CT: control target
= control target key end

     0   :  { %12 = vsyncpa [#allocation3], 0  ;;  %s432_s0 = inlined_call_operand.hbm [shape: f32[8,32], index: 0, kind: input, shape index: {}]   ;;  %s433_s1 = inlined_call_operand.hbm [shape: f32[32,128], index: 1, kind: input, shape index: {}]   ;;  %s434_s2 = inlined_call_operand.vmem [shape: f32[1,128], index: 2, kind: input, shape index: {}]   ;;  %s435_s3 = inlined_call_operand.hbm [shape: f32[128,128], index: 3, kind: input, shape index: {}]   ;;  %s436_s4 = inlined_call_operand.vmem [shape: f32[1,128], index: 4, kind: input, shape index: {}]   ;;  %s437_s5 = inlined_call_operand.hbm [shape: f32[128,128], index: 5, kind: input, shape index: {}]   ;;  %s438_s6 = inlined_call_operand.vmem [shape: f32[1,128], index: 6, kind: input, shape index: {}]   ;;  %s439_s7 = inlined_call_operand.hbm [shape: f32[8,128], index: 7, kind: output, shape index: {}]  }
   0x1   :  { %13 = vsyncpa [#allocation6], 0 }
   0x2   :  { %14 = vsyncpa [#allocation9], 0  ;;  %s31_s26 = sshll.u32 %s433_s1, 4  ;;  %s32_s26 = int_to_ptr.hbm [resolvable:$true] %s31_s26 }
   0x3   :  { %15 = vsyncpa [#allocation4], 0  ;;  %s361_s27 = smov [#allocation5]   ;;  %s21_s8 = sshll.u32 %s432_s0, 4  ;;  %s22_s8 = int_to_ptr.hbm [resolvable:$true] %s21_s8 }
   0x4   :  { %s33_s28 = sshll.u32 %s361_s27, 4  ;;  %s362_s9 = smov 128   ;;  %s34_s28 = int_to_ptr.vmem [resolvable:$true] %s33_s28 }
   0x5   :  { %s363_s10 = smov 8   ;;  %s364_s11 = smov [#allocation2]  }
   0x6   :  { %39 = dma.hbm_to_vmem [thread:$0]  %s32_s26, 512, %s34_s28, [#allocation6], %s362_s9, %s362_s9, %s363_s10  }
   0x7   :  { %s23_s12 = sshll.u32 %s364_s11, 4  ;;  %s46_s15 = sshll.u32 %s435_s3, 4  ;;  %s24_s12 = int_to_ptr.vmem [resolvable:$true] %s23_s12  ;;  %s47_s15 = int_to_ptr.hbm [resolvable:$true] %s46_s15 }
   0x8   :  { %26 = dma.hbm_to_vmem [thread:$0]  %s22_s8, 128, %s24_s12, [#allocation3]  }
   0x9   :  { %s61_s17 = sshll.u32 %s437_s5, 4  ;;  %s365_s18 = smov [#allocation7]   ;;  %s62_s17 = int_to_ptr.hbm [resolvable:$true] %s61_s17 }
   0xa   :  { %s48_s19 = sshll.u32 %s365_s18, 4  ;;  %s366_s0 = smov [#allocation8]   ;;  %s49_s19 = int_to_ptr.vmem [resolvable:$true] %s48_s19 }
   0xb   :  { %54 = dma.hbm_to_vmem [thread:$0]  %s47_s15, 2048, %s49_s19, [#allocation6], %s362_s9, %s362_s9, %s363_s10  }
   0xc   :  { %s63_s20 = sshll.u32 %s366_s0, 4  ;;  %s64_s20 = int_to_ptr.vmem [resolvable:$true] %s63_s20 }
   0xd   :  { %69 = dma.hbm_to_vmem [thread:$0]  %s62_s17, 2048, %s64_s20, [#allocation9], %s362_s9, %s362_s9, %s363_s10  }
   0xe   :  { %353 = dma.done.wait [#allocation3], 128  }
   0xf   :  { %354 = vsyncadd [#allocation3], 4294967168 }
  0x10   :  { %355 = dma.done.wait [#allocation6], 2560  }
  0x11   :  { %356 = vsyncadd [#allocation6], 4294964736 }
  0x12   :  { %357 = dma.done.wait [#allocation9], 2048  }
  0x13   :  { %358 = vsyncadd [#allocation9], 4294965248  ;;  %v92_v0 = vld [vmem:[#allocation5 + $0x18] sm:$0xff]  ;;  %v91_v1 = vld [vmem:[#allocation5 + $0x10] sm:$0xff]  ;;  %vm97_vm0 = vcmask 261120   ;;  %s210_s28 = sshll.u32 %s439_s7, 4  ;;  %s211_s28 = int_to_ptr.hbm [resolvable:$true] %s210_s28 }
  0x14   :  { %113 = vmatpush.msra.mxu0 %v92_v0  ;;  %v136_v2 = vld [vmem:[#allocation7 + $0x78] sm:$0xff]  ;;  %v90_v3 = vld [vmem:[#allocation5 + $0x8] sm:$0xff]  ;;  %v135_v4 = vld [vmem:[#allocation7 + $0x70] sm:$0xff] }
  0x15   :  { %141 = vmatpush.msra.mxu1 %v136_v2  ;;  %v134_v5 = vld [vmem:[#allocation7 + $0x68] sm:$0xff]  ;;  %v89_v6 = vld [vmem:[#allocation5] sm:$0xff]  ;;  %v88_v7 = vld [vmem:[#allocation2] sm:$0xff] }
  0x16   :  { %114 = vmatpush.msra.mxu0 %v91_v1  ;;  %v133_v8 = vld [vmem:[#allocation7 + $0x60] sm:$0xff]  ;;  %v132_v9 = vld [vmem:[#allocation7 + $0x58] sm:$0xff]  ;;  %v131_v10 = vld [vmem:[#allocation7 + $0x50] sm:$0xff] }
  0x17   :  { %142 = vmatpush.msra.mxu1 %v135_v4  ;;  %v130_v11 = vld [vmem:[#allocation7 + $0x48] sm:$0xff]  ;;  %v129_v12 = vld [vmem:[#allocation7 + $0x40] sm:$0xff]  ;;  %v128_v13 = vld [vmem:[#allocation7 + $0x38] sm:$0xff] }
  0x18   :  { %115 = vmatpush.msra.mxu0 %v90_v3  ;;  %v127_v14 = vld [vmem:[#allocation7 + $0x30] sm:$0xff]  ;;  %v126_v15 = vld [vmem:[#allocation7 + $0x28] sm:$0xff]  ;;  %v125_v16 = vld [vmem:[#allocation7 + $0x20] sm:$0xff] }
  0x19   :  { %143 = vmatpush.msra.mxu1 %v134_v5  ;;  %v124_v17 = vld [vmem:[#allocation7 + $0x18] sm:$0xff]  ;;  %v123_v18 = vld [vmem:[#allocation7 + $0x10] sm:$0xff]  ;;  %v122_v19 = vld [vmem:[#allocation7 + $0x8] sm:$0xff] }
  0x1a   :  { %116 = vmatpush.msra.mxu0 %v89_v6  ;;  %v121_v20 = vld [vmem:[#allocation7] sm:$0xff]  ;;  %v177_v21 = vld [vmem:[#allocation8 + $0x78] sm:$0xff]  ;;  %v176_v22 = vld [vmem:[#allocation8 + $0x70] sm:$0xff] }
  0x1b   :  { %222 = vmatmul.msk.f32.vlgmr.msra.gmra.mxu0 %vm97_vm0, %v88_v7  ;;  %144 = vmatpush.msra.mxu1 %v133_v8  ;;  %v175_v23 = vld [vmem:[#allocation8 + $0x68] sm:$0xff]  ;;  %v174_v24 = vld [vmem:[#allocation8 + $0x60] sm:$0xff]  ;;  %v173_v25 = vld [vmem:[#allocation8 + $0x58] sm:$0xff] }
  0x1c   :  { %182 = vmatpush.msra.mxu2 %v177_v21  ;;  %v172_v26 = vld [vmem:[#allocation8 + $0x50] sm:$0xff]  ;;  %v171_v27 = vld [vmem:[#allocation8 + $0x48] sm:$0xff]  ;;  %v170_v28 = vld [vmem:[#allocation8 + $0x40] sm:$0xff] }
  0x1d   :  { %145 = vmatpush.msra.mxu1 %v132_v9  ;;  %v169_v29 = vld [vmem:[#allocation8 + $0x38] sm:$0xff]  ;;  %v168_v30 = vld [vmem:[#allocation8 + $0x30] sm:$0xff]  ;;  %v167_v31 = vld [vmem:[#allocation8 + $0x28] sm:$0xff] }
  0x1e   :  { %183 = vmatpush.msra.mxu2 %v176_v22  ;;  %v166_v32 = vld [vmem:[#allocation8 + $0x20] sm:$0xff]  ;;  %v165_v33 = vld [vmem:[#allocation8 + $0x18] sm:$0xff]  ;;  %v164_v37 = vld [vmem:[#allocation8 + $0x10] sm:$0xff] }
  0x1f   :  { %146 = vmatpush.msra.mxu1 %v131_v10  ;;  %v230_v34 = vld [vmem:[%s434_s2] ss:$0 sm:$0xff]  ;;  %v163_v38 = vld [vmem:[#allocation8 + $0x8] sm:$0xff]  ;;  %v162_v39 = vld [vmem:[#allocation8] sm:$0xff]  ;;  %s367_s2 = smov [#allocation10]  }
  0x20   :  { %184 = vmatpush.msra.mxu2 %v175_v23  ;;  %v231_v40 = vld [vmem:[%s436_s4] ss:$0 sm:$0xff]  ;;  %s208_s25 = sshll.u32 %s367_s2, 4  ;;  %s209_s25 = int_to_ptr.vmem [resolvable:$true] %s208_s25 }
  0x21   :  { %147 = vmatpush.msra.mxu1 %v130_v11  ;;  %v232_v44 = vld [vmem:[%s438_s6] ss:$0 sm:$0xff] }
  0x22   :  { %185 = vmatpush.msra.mxu2 %v174_v24 }
  0x23   :  { %148 = vmatpush.msra.mxu1 %v129_v12 }
  0x24   :  { %186 = vmatpush.msra.mxu2 %v173_v25 }
  0x25   :  { %149 = vmatpush.msra.mxu1 %v128_v13 }
  0x26   :  { %187 = vmatpush.msra.mxu2 %v172_v26 }
  0x27   :  { %150 = vmatpush.msra.mxu1 %v127_v14 }
  0x28   :  { %188 = vmatpush.msra.mxu2 %v171_v27 }
  0x29   :  { %151 = vmatpush.msra.mxu1 %v126_v15 }
  0x2a   :  { %189 = vmatpush.msra.mxu2 %v170_v28 }
  0x2b   :  { %152 = vmatpush.msra.mxu1 %v125_v16 }
  0x2c   :  { %190 = vmatpush.msra.mxu2 %v169_v29 }
  0x2d   :  { %153 = vmatpush.msra.mxu1 %v124_v17 }
  0x2e   :  { %191 = vmatpush.msra.mxu2 %v168_v30 }
  0x2f   :  { %154 = vmatpush.msra.mxu1 %v123_v18 }
  0x30   :  { %192 = vmatpush.msra.mxu2 %v167_v31 }
  0x31   :  { %155 = vmatpush.msra.mxu1 %v122_v19 }
  0x32   :  { %193 = vmatpush.msra.mxu2 %v166_v32 }
  0x33   :  { %156 = vmatpush.msra.mxu1 %v121_v20 }
  0x34   :  { %194 = vmatpush.msra.mxu2 %v165_v33 }
  0x36   :  { %195 = vmatpush.msra.mxu2 %v164_v37 }
  0x38   :  { %196 = vmatpush.msra.mxu2 %v163_v38 }
  0x3a   :  { %197 = vmatpush.msra.mxu2 %v162_v39 }
  0x98   :  { %v118_v35 = vpop.f32.mrf.mxu0 }
  0x99   :  { %v119_v36 = vadd.f32 %v230_v34, %v118_v35 }
  0x9b   :  { %157 = vmatmul.f32.vlgmr.msra.gmra.mxu1 %v119_v36 }
 0x118   :  { %v158_v41 = vpop.f32.mrf.mxu1 }
 0x119   :  { %v159_v42 = vadd.f32 %v231_v40, %v158_v41 }
 0x11b   :  { %v161_v43 = vmax.f32 %v159_v42, 0.0 }
 0x11d   :  { %198 = vmatmul.f32.vlgmr.msra.gmra.mxu2 %v161_v43 }
 0x1a0   :  { %v199_v45 = vpop.f32.mrf.mxu2 }
 0x1a1   :  { %v200_v46 = vadd.f32 %v232_v44, %v199_v45 }
 0x1a3   :  { %202 = vst [vmem:[#allocation10] sm:$0xff] %v200_v46 }
 0x1a4   :  { %213 = dma.vmem_to_hbm [thread:$0]  %s209_s25, 128, %s211_s28, [#allocation4]  }
 0x1a5   :  { %359 = dma.done.wait [#allocation4], 128  }
 0x1a6   :  { %360 = vsyncadd [#allocation4], 4294967168 }
 0x1a7   :  { %218 = vsyncpa [#allocation3], 1 }
 0x1a8   :  { %219 = vsyncpa [#allocation6], 1 }
 0x1a9   :  { %220 = vsyncpa [#allocation9], 1 }
 0x1aa   :  { %221 = vsyncpa [#allocation4], 1 }

</bundles_post_ra>
